<compile_context>
chip_gen: v7x
topology: tpu7x:2x2x1
jax: 0.10.0
libtpu: 0.0.40
codegen_flags: <defaults>
</compile_context>

<pallas_src>
import math
from functools import lru_cache, partial

import jax
import jax.numpy as jnp
from jax import lax
from jax.experimental import pallas as pl
from jax.experimental.pallas import tpu as pltpu

TEMPERATURE = 4.0
_V7X_SAFE_VMEM = 48 * 1024 * 1024   # stay under v7x's 64 MiB physical VMEM


def _round_up(x, m):
    return ((x + m - 1) // m) * m


def _footprint_bytes(tb, d_s, d_t, use_proj):
    tiles = 2 * tb * (d_s + d_t) * 4            # double-buffered student+teacher tiles
    weight = (2 * d_s * d_t * 4) if use_proj else 0
    live = 5 * tb * d_t * 4                     # rough live f32 temporaries in the body
    return tiles + weight + live


def _choose_block_rows(batch, d_s, d_t, use_proj, requested):
    tb = min(int(requested), _round_up(batch, 8))
    tb = max(8, (tb // 8) * 8)
    while tb > 8 and _footprint_bytes(tb, d_s, d_t, use_proj) > _V7X_SAFE_VMEM:
        tb = max(8, ((tb // 2) // 8) * 8)
    return tb


@lru_cache(maxsize=None)
def _build_distill_loss(B, padded_B, TB, D_s, D_t, temperature, use_proj,
                        use_bf16_matmul):
    """Fused kernel: (optional) projection -> softened KL, row-tiled over B."""
    inv_t = 1.0 / temperature
    out_scale = (temperature * temperature) / B      # batchmean * T^2
    num_tiles = padded_B // TB
    needs_mask = padded_B != B

    def kernel(*refs):
        if use_proj:
            s_ref, t_ref, w_ref, o_ref, acc_ref = refs
        else:
            s_ref, t_ref, o_ref, acc_ref = refs

        i = pl.program_id(0)

        @pl.when(i == 0)
        def _():
            acc_ref[...] = jnp.zeros_like(acc_ref)

        if use_proj:
            s_in = s_ref[...]
            w = w_ref[...]
            if use_bf16_matmul:
                s_in = s_in.astype(jnp.bfloat16)
                w = w.astype(jnp.bfloat16)
            s_logits = jnp.dot(s_in, w,
                               preferred_element_type=jnp.float32) * inv_t
        else:
            s_logits = s_ref[...].astype(jnp.float32) * inv_t
        t_logits = t_ref[...].astype(jnp.float32) * inv_t

        # Student log-softmax pieces (only the shifted logits + LSE stay live).
        s_shift = s_logits - jnp.max(s_logits, axis=-1, keepdims=True)
        s_lse = jnp.log(jnp.sum(jnp.exp(s_shift), axis=-1, keepdims=True))

        # Teacher softmax: reuse exp(t_shift) for both the LSE and the probs
        # (one full-width exp over D_t instead of two).
        t_shift = t_logits - jnp.max(t_logits, axis=-1, keepdims=True)
        t_exp = jnp.exp(t_shift)
        t_sum = jnp.sum(t_exp, axis=-1, keepdims=True)
        t_prob = t_exp * pl.reciprocal(t_sum, approx=False)
        t_lse = jnp.log(t_sum)

        # Per-row KL, folded into one fused reduction:
        #   sum_j p_j*((t_shift_j - t_lse) - (s_shift_j - s_lse))
        # = sum_j p_j*(t_shift_j - s_shift_j) + (s_lse - t_lse)   [sum_j p_j == 1]
        row_kl = (jnp.sum(t_prob * (t_shift - s_shift), axis=-1, keepdims=True)
                  + (s_lse - t_lse))                               # [TB, 1]

        if needs_mask:
            row_idx = i * TB + lax.broadcasted_iota(jnp.int32, (TB, 1), 0)
            row_kl = jnp.where(row_idx < B, row_kl, 0.0)

        acc_ref[...] += jnp.sum(row_kl, axis=0, keepdims=True)

        @pl.when(i == num_tiles - 1)
        def _():
            o_ref[...] = acc_ref[...] * out_scale

    in_specs = [pl.BlockSpec((TB, D_s), lambda i: (i, 0)),
                pl.BlockSpec((TB, D_t), lambda i: (i, 0))]
    if use_proj:
        # Constant index_map: weight DMA'd once, stays resident across tiles.
        in_specs.append(pl.BlockSpec((D_s, D_t), lambda i: (0, 0)))

    vmem_limit = int(min(max(_footprint_bytes(TB, D_s, D_t, use_proj) + (4 << 20),
                             32 << 20), 56 << 20))

    return pl.pallas_call(
        kernel,
        grid=(num_tiles,),
        in_specs=in_specs,
        out_specs=pl.BlockSpec((1, 1), lambda i: (0, 0)),
        out_shape=jax.ShapeDtypeStruct((1, 1), jnp.float32),
        scratch_shapes=[pltpu.VMEM((1, 1), jnp.float32)],
        compiler_params=pltpu.CompilerParams(
            dimension_semantics=("arbitrary",),
            vmem_limit_bytes=vmem_limit),
    )


def distillation_loss(student_features, teacher_features, proj_w=None,
                      temperature=TEMPERATURE, block_rows=512,
                      use_bf16_matmul=False):
    """Fused Pallas equivalent of DistillationLoss.forward (eval semantics)."""
    B, D_s = student_features.shape
    Bt, D_t = teacher_features.shape
    assert B == Bt
    use_proj = D_s != D_t
    if use_proj and proj_w is None:
        raise ValueError("projection weight required when feature dims differ")

    TB = _choose_block_rows(B, D_s, D_t, use_proj, block_rows)
    padded_B = _round_up(B, TB)
    if padded_B != B:
        pad = padded_B - B
        student_features = jnp.pad(student_features, ((0, pad), (0, 0)))
        teacher_features = jnp.pad(teacher_features, ((0, pad), (0, 0)))

    fn = _build_distill_loss(B, padded_B, TB, D_s, D_t, float(temperature),
                             use_proj, bool(use_bf16_matmul))
    args = (student_features, teacher_features)
    if use_proj:
        assert proj_w.shape == (D_s, D_t)
        args = args + (proj_w,)
    return fn(*args)[0, 0]


def make_projection(key, d_in, d_out):
    # Matches nn.Linear(d_in, d_out, bias=False) default init:
    # kaiming_uniform(a=sqrt(5)) == uniform(-1/sqrt(d_in), 1/sqrt(d_in)).
    # Stored as [d_in, d_out] so the kernel computes x @ W.
    bound = 1.0 / math.sqrt(d_in)
    return jax.random.uniform(key, (d_in, d_out), jnp.float32, -bound, bound)


def _reference_loss(student, teacher, proj_w=None, temperature=TEMPERATURE):
    # Plain-JAX reference for correctness checking.
    s = student @ proj_w if student.shape[1] != teacher.shape[1] else student
    s_lp = jax.nn.log_softmax(s / temperature, axis=1)
    t_p = jax.nn.softmax(teacher / temperature, axis=1)
    kl = jnp.sum(t_p * (jnp.log(t_p) - s_lp)) / student.shape[0]
    return kl * temperature * temperature


def _check(got, want, rtol=1e-4):
    got, want = float(got), float(want)
    assert abs(got - want) <= rtol * max(1.0, abs(want)), (got, want)


if __name__ == "__main__":
    key = jax.random.PRNGKey(0)
    ks, kt, kw, ks2, ks3, kt3 = jax.random.split(key, 6)

    # Small shapes consistent with the module: student [B, D1], teacher [B, D2].
    B, D_S, D_T = 2, 64, 128
    student = jax.random.normal(ks, (B, D_S), dtype=jnp.float32)
    teacher = jax.random.normal(kt, (B, D_T), dtype=jnp.float32)
    proj_w = make_projection(kw, D_S, D_T)

    jitted = jax.jit(distillation_loss)

    # Mismatched-dims path (in-kernel projection matmul, resident weight).
    loss = jax.block_until_ready(jitted(student, teacher, proj_w))
    assert loss.shape == ()
    assert bool(jnp.isfinite(loss))
    _check(loss, _reference_loss(student, teacher, proj_w))

    # Matched-dims path (projection skipped at build time).
    student_eq = jax.random.normal(ks2, (B, D_T), dtype=jnp.float32)
    loss_eq = jax.block_until_ready(jitted(student_eq, teacher))
    assert bool(jnp.isfinite(loss_eq))
    _check(loss_eq, _reference_loss(student_eq, teacher))

    # Multi-tile path: exercises the grid accumulator + padded-row masking.
    B2 = 200
    student2 = jax.random.normal(ks3, (B2, D_T), dtype=jnp.float32)
    teacher2 = jax.random.normal(kt3, (B2, D_T), dtype=jnp.float32)
    loss_mt = jax.block_until_ready(
        jax.jit(partial(distillation_loss, block_rows=64))(student2, teacher2))
    assert bool(jnp.isfinite(loss_mt))
    _check(loss_mt, _reference_loss(student2, teacher2))

    print("KERNEL_OK")
</pallas_src>

<mosaic_0001>
module attributes {stable_mosaic.version = 11 : i64} {
  func.func @kernel(%arg0: i32, %arg1: memref<8x64xf32, #tpu.memory_space<vmem>>, %arg2: memref<8x128xf32, #tpu.memory_space<vmem>>, %arg3: memref<64x128xf32, #tpu.memory_space<vmem>>, %arg4: memref<1x1xf32, #tpu.memory_space<vmem>>, %arg5: memref<1x1xf32, #tpu.memory_space<vmem>>) attributes {dimension_semantics = [#tpu.dimension_semantics<arbitrary>], iteration_bounds = array<i64: 1>, scalar_prefetch = 0 : i64, scratch_operands = 1 : i64, tpu.core_type = #tpu.core_type<tc>, window_params = [{transform_indices = @transform_0, window_bounds = array<i64: 8, 64>}, {transform_indices = @transform_1, window_bounds = array<i64: 8, 128>}, {pipeline_mode = #tpu.pipeline_mode<synchronous>, transform_indices = @transform_2, window_bounds = array<i64: 64, 128>}, {pipeline_mode = #tpu.pipeline_mode<synchronous>, transform_indices = @transform_3, window_bounds = array<i64: 1, 1>}]} {
    %c0_i32 = arith.constant 0 : i32
    %0 = arith.cmpi eq, %arg0, %c0_i32 : i32
    %1 = arith.extui %0 : i1 to i32
    %c0_i32_0 = arith.constant 0 : i32
    %2 = arith.cmpi ne, %1, %c0_i32_0 : i32
    scf.if %2 {
      %cst_21 = arith.constant 0.000000e+00 : f32
      %52 = vector.broadcast %cst_21 : f32 to vector<1x1xf32>
      %c0_22 = arith.constant 0 : index
      %c0_23 = arith.constant 0 : index
      %53 = vector.load %arg5[%c0_22, %c0_23] : memref<1x1xf32, #tpu.memory_space<vmem>>, vector<1x1xf32>
      tpu.vector_store %arg5[%c0_22, %c0_23], %52 {strides = array<i32>} : memref<1x1xf32, #tpu.memory_space<vmem>>, vector<1x1xf32>,
    } else {
    }
    %c0 = arith.constant 0 : index
    %c0_1 = arith.constant 0 : index
    %3 = vector.load %arg1[%c0, %c0_1] : memref<8x64xf32, #tpu.memory_space<vmem>>, vector<8x64xf32>
    %c0_2 = arith.constant 0 : index
    %c0_3 = arith.constant 0 : index
    %4 = vector.load %arg3[%c0_2, %c0_3] : memref<64x128xf32, #tpu.memory_space<vmem>>, vector<64x128xf32>
    %cst = arith.constant dense<0.000000e+00> : vector<8x128xf32>
    %5 = tpu.matmul %3, %4, %cst {dimension_numbers = #tpu.dot_dimension_numbers<[1], [0], [0], [1], [0, 0, 1, 1], [], []>} : vector<8x64xf32>, vector<64x128xf32>, vector<8x128xf32> -> vector<8x128xf32>
    %cst_4 = arith.constant 2.500000e-01 : f32
    %6 = vector.broadcast %cst_4 : f32 to vector<8x128xf32>
    %7 = arith.mulf %5, %6 : vector<8x128xf32>
    %c0_5 = arith.constant 0 : index
    %c0_6 = arith.constant 0 : index
    %8 = vector.load %arg2[%c0_5, %c0_6] : memref<8x128xf32, #tpu.memory_space<vmem>>, vector<8x128xf32>
    %cst_7 = arith.constant 2.500000e-01 : f32
    %9 = vector.broadcast %cst_7 : f32 to vector<8x128xf32>
    %10 = arith.mulf %8, %9 : vector<8x128xf32>
    %cst_8 = arith.constant dense<0xFF800000> : vector<8xf32>
    %11 = vector.multi_reduction <maximumf>, %7, %cst_8 [1] : vector<8x128xf32> to vector<8xf32>
    %12 = vector.shape_cast %11 : vector<8xf32> to vector<8x1xf32>
    %13 = vector.broadcast %12 : vector<8x1xf32> to vector<8x128xf32>
    %14 = arith.subf %7, %13 : vector<8x128xf32>
    %15 = math.exp %14 : vector<8x128xf32>
    %cst_9 = arith.constant dense<0.000000e+00> : vector<8xf32>
    %16 = vector.multi_reduction <add>, %15, %cst_9 [1] : vector<8x128xf32> to vector<8xf32>
    %17 = vector.shape_cast %16 : vector<8xf32> to vector<8x1xf32>
    %18 = math.log %17 : vector<8x1xf32>
    %cst_10 = arith.constant dense<0xFF800000> : vector<8xf32>
    %19 = vector.multi_reduction <maximumf>, %10, %cst_10 [1] : vector<8x128xf32> to vector<8xf32>
    %20 = vector.shape_cast %19 : vector<8xf32> to vector<8x1xf32>
    %21 = vector.broadcast %20 : vector<8x1xf32> to vector<8x128xf32>
    %22 = arith.subf %10, %21 : vector<8x128xf32>
    %23 = math.exp %22 : vector<8x128xf32>
    %cst_11 = arith.constant dense<0.000000e+00> : vector<8xf32>
    %24 = vector.multi_reduction <add>, %23, %cst_11 [1] : vector<8x128xf32> to vector<8xf32>
    %25 = vector.shape_cast %24 : vector<8xf32> to vector<8x1xf32>
    %26 = tpu.reciprocal %25 : vector<8x1xf32> -> vector<8x1xf32>
    %27 = vector.broadcast %26 : vector<8x1xf32> to vector<8x128xf32>
    %28 = arith.mulf %23, %27 : vector<8x128xf32>
    %29 = math.log %25 : vector<8x1xf32>
    %30 = arith.subf %22, %14 : vector<8x128xf32>
    %31 = arith.mulf %28, %30 : vector<8x128xf32>
    %cst_12 = arith.constant dense<0.000000e+00> : vector<8xf32>
    %32 = vector.multi_reduction <add>, %31, %cst_12 [1] : vector<8x128xf32> to vector<8xf32>
    %33 = vector.shape_cast %32 : vector<8xf32> to vector<8x1xf32>
    %34 = arith.subf %18, %29 : vector<8x1xf32>
    %35 = arith.addf %33, %34 : vector<8x1xf32>
    %c8_i32 = arith.constant 8 : i32
    %36 = arith.muli %arg0, %c8_i32 : i32
    %37 = tpu.iota {dimensions = array<i32: 0>} : vector<8x1xi32>
    %38 = vector.broadcast %36 : i32 to vector<8x1xi32>
    %39 = arith.addi %38, %37 : vector<8x1xi32>
    %c2_i32 = arith.constant 2 : i32
    %40 = vector.broadcast %c2_i32 : i32 to vector<8x1xi32>
    %41 = arith.cmpi slt, %39, %40 : vector<8x1xi32>
    %cst_13 = arith.constant 0.000000e+00 : f32
    %42 = vector.broadcast %cst_13 : f32 to vector<8x1xf32>
    %43 = arith.select %41, %35, %42 : vector<8x1xi1>, vector<8x1xf32>
    %c0_14 = arith.constant 0 : index
    %c0_15 = arith.constant 0 : index
    %44 = vector.load %arg5[%c0_14, %c0_15] : memref<1x1xf32, #tpu.memory_space<vmem>>, vector<1x1xf32>
    %cst_16 = arith.constant dense<0.000000e+00> : vector<1xf32>
    %45 = vector.multi_reduction <add>, %43, %cst_16 [0] : vector<8x1xf32> to vector<1xf32>
    %46 = vector.shape_cast %45 : vector<1xf32> to vector<1x1xf32>
    %47 = arith.addf %44, %46 : vector<1x1xf32>
    %c0_17 = arith.constant 0 : index
    %c0_18 = arith.constant 0 : index
    %48 = vector.load %arg5[%c0_17, %c0_18] : memref<1x1xf32, #tpu.memory_space<vmem>>, vector<1x1xf32>
    tpu.vector_store %arg5[%c0_17, %c0_18], %47 {strides = array<i32>} : memref<1x1xf32, #tpu.memory_space<vmem>>, vector<1x1xf32>,
    %c0_i32_19 = arith.constant 0 : i32
    %49 = arith.cmpi eq, %arg0, %c0_i32_19 : i32
    %50 = arith.extui %49 : i1 to i32
    %c0_i32_20 = arith.constant 0 : i32
    %51 = arith.cmpi ne, %50, %c0_i32_20 : i32
    scf.if %51 {
      %c0_21 = arith.constant 0 : index
      %c0_22 = arith.constant 0 : index
      %52 = vector.load %arg5[%c0_21, %c0_22] : memref<1x1xf32, #tpu.memory_space<vmem>>, vector<1x1xf32>
      %cst_23 = arith.constant 8.000000e+00 : f32
      %53 = vector.broadcast %cst_23 : f32 to vector<1x1xf32>
      %54 = arith.mulf %52, %53 : vector<1x1xf32>
      %c0_24 = arith.constant 0 : index
      %c0_25 = arith.constant 0 : index
      %55 = vector.load %arg4[%c0_24, %c0_25] : memref<1x1xf32, #tpu.memory_space<vmem>>, vector<1x1xf32>
      tpu.vector_store %arg4[%c0_24, %c0_25], %54 {strides = array<i32>} : memref<1x1xf32, #tpu.memory_space<vmem>>, vector<1x1xf32>,
    } else {
    }
    return
  }
  func.func @transform_0(%arg0: i32) -> (i32, i32) {
    %c0_i32 = arith.constant 0 : i32
    %c0_i32_0 = arith.constant 0 : i32
    return %arg0, %c0_i32 : i32, i32
  }
  func.func @transform_1(%arg0: i32) -> (i32, i32) {
    %c0_i32 = arith.constant 0 : i32
    %c0_i32_0 = arith.constant 0 : i32
    return %arg0, %c0_i32 : i32, i32
  }
  func.func @transform_2(%arg0: i32) -> (i32, i32) {
    %c0_i32 = arith.constant 0 : i32
    %c0_i32_0 = arith.constant 0 : i32
    %c0_i32_1 = arith.constant 0 : i32
    return %c0_i32, %c0_i32_0 : i32, i32
  }
  func.func @transform_3(%arg0: i32) -> (i32, i32) {
    %c0_i32 = arith.constant 0 : i32
    %c0_i32_0 = arith.constant 0 : i32
    %c0_i32_1 = arith.constant 0 : i32
    return %c0_i32, %c0_i32_0 : i32, i32
  }
}

</mosaic_0001>

<bundles_post_ra>
// kernel: distillation_loss.1
= control target key start
LH: loop header
LB: loop body
LE: loop exit
PB: predicated region body
PF: predicated region fallthrough
CT: control target
= control target key end

     0   :  { %8 = vsyncpa [#allocation4], 0  ;;  %s351_s0 = inlined_call_operand.vmem [shape: f32[8,64], index: 0, kind: input, shape index: {}]   ;;  %s352_s1 = inlined_call_operand.vmem [shape: f32[8,128], index: 1, kind: input, shape index: {}]   ;;  %s353_s2 = inlined_call_operand.hbm [shape: f32[64,128], index: 2, kind: input, shape index: {}]   ;;  %s354_s3 = inlined_call_operand.hbm [shape: f32[1,1], index: 3, kind: output, shape index: {}]  }
   0x1   :  { %9 = vsyncpa [#allocation5], 0  ;;  %s291_s12 = smov [#allocation3]   ;;  %s243_s16 = scalar_lea.hbm %s353_s2, 1024 }
   0x2   :  { %s19_s13 = sshll.u32 %s291_s12, 4  ;;  %p244_p0 = scmp.ne.s32.totalorder %s353_s2, %s243_s16  ;;  %s20_s13 = int_to_ptr.vmem [resolvable:$true] %s19_s13 }
   0x3   :  { %p247_p1 = scmp.lt.u32.totalorder %s243_s16, %s353_s2 }
   0x5   :  { %p249_p2 = pnand %p247_p1, %p244_p0 }
   0x7   :  { %252 = shalt.err (!%p249_p2)
}
   0x8   :  { %s253_s21 = scalar_lea.vmem %s20_s13, 1024  ;;  %p258_p4 = scmp.lt.s32.totalorder %s20_s13, %s20_s13 }
   0x9   :  { %p254_p3 = scmp.ne.s32.totalorder %s20_s13, %s253_s21  ;;  %p259_p5 = scmp.lt.s32.totalorder %s253_s21, %s253_s21 }
   0xb   :  { %p260_p6 = por %p259_p5, %p258_p4 }
   0xd   :  { %p261_p7 = pnand %p260_p6, %p254_p3 }
   0xf   :  { %264 = shalt.err (!%p261_p7)
}
  0x10   :  { %s292_s22 = smov 128   ;;  %s293_s23 = smov 8  }
  0x11   :  { %25 = dma.hbm_to_vmem [thread:$0]  %s353_s2, 1024, %s20_s13, [#allocation4], %s292_s22, %s292_s22, %s293_s23  }
  0x12   :  { %287 = dma.done.wait [#allocation4], 1024  }
  0x13   :  { %288 = vsyncadd [#allocation4], 4294966272  ;;  %vm33_vm0 = vcmask 0   ;;  %v294_v0 = vmov 0.0|0.0   ;;  %v295_v1 = vmov 0.0   ;;  %vm296_vm1 = vmmov 0  }
  0x14   :  { %214 = vmatprep.subr.bf16.mxu0 %v294_v0  ;;  %34 = vst.msk [vmem:[#allocation2] sm:$0x1] %vm33_vm0, %v295_v1  ;;  %211 = vmatprep.mubr.msk.f32.mxu0 %vm296_vm1, %v295_v1  ;;  %v119_v2 = vld [vmem:[%s352_s1] sm:$0xff]  ;;  %v37_v4 = vld [vmem:[#allocation3 + $0x8] sm:$0xff]  ;;  %v38_v7 = vld [vmem:[#allocation3 + $0x10] sm:$0xff]  ;;  %vm44_vm2 = vcmask 523264   ;;  %v148_v34 = vlaneseq }
  0x15   :  { %v36_v3 = vld [vmem:[#allocation3] sm:$0xff]  ;;  %v120_v5 = vmul.f32 0.25, %v119_v2  ;;  %v39_v8 = vld [vmem:[#allocation3 + $0x18] sm:$0xff]  ;;  %v41_v11 = vld [vmem:[#allocation3 + $0x28] sm:$0xff] }
  0x16   :  { %v215_v6 = vpack.c.bf16 %v37_v4, %v36_v3  ;;  %v218_v9 = vpack.c.bf16 %v39_v8, %v38_v7  ;;  %v40_v10 = vld [vmem:[#allocation3 + $0x20] sm:$0xff]  ;;  %v42_v13 = vld [vmem:[#allocation3 + $0x30] sm:$0xff]  ;;  %v43_v14 = vld [vmem:[#allocation3 + $0x38] sm:$0xff]  ;;  %v149_v37 = vshrl.u32 %v148_v34, 7 }
  0x17   :  { %130 = vmax.xlane.f32.xlu0 %v120_v5  ;;  %v221_v12 = vpack.c.bf16 %v41_v11, %v40_v10  ;;  %v224_v15 = vpack.c.bf16 %v43_v14, %v42_v13  ;;  %v35_v16 = vld [vmem:[%s351_s0] sm:$0xff]  ;;  %s297_s0 = smov [#allocation6]  }
  0x18   :  { %216 = vmatpush3.bf16.msra.mxu0 %v215_v6  ;;  %vm152_vm3 = vcmp.lt.s32.totalorder %v149_v37, 2  ;;  %s176_s28 = sshll.u32 %s297_s0, 4  ;;  %s177_s28 = int_to_ptr.vmem [resolvable:$true] %s176_s28 }
  0x19   :  { %217 = vmatprep.subr.bf16.mxu0 %v294_v0  ;;  %s265_s29 = scalar_lea.vmem %s177_s28, 16  ;;  %s269_s30 = scalar_lea.vmem %s177_s28, 32 }
  0x1a   :  { %p266_p8 = scmp.ne.s32.totalorder %s177_s28, %s265_s29  ;;  %p270_p9 = scmp.lt.s32.totalorder %s177_s28, %s177_s28 }
  0x1b   :  { %v154_v49 = vld [vmem:[#allocation2] sm:$0x1]  ;;  %p271_p10 = scmp.lt.s32.totalorder %s269_s30, %s265_s29 }
  0x1c   :  { %219 = vmatpush3.bf16.msra.mxu0 %v218_v9 }
  0x1d   :  { %220 = vmatprep.subr.bf16.mxu0 %v294_v0  ;;  %p272_p11 = por %p271_p10, %p270_p9 }
  0x1f   :  { %p273_p12 = pnand %p272_p11, %p266_p8 }
  0x20   :  { %222 = vmatpush3.bf16.msra.mxu0 %v221_v12 }
  0x21   :  { %223 = vmatprep.subr.bf16.mxu0 %v294_v0 }
  0x24   :  { %225 = vmatpush3.bf16.msra.mxu0 %v224_v15 }
  0x27   :  { %212 = vmatmul.mubr.msk.f32.vlgmr.msra.gmra.mrb[0].mxu0 %vm44_vm2, %v35_v16 }
  0xa4   :  { %v131_v17 = vpop.xlane.xlu0 %130 }
  0xa5   :  { %v132_v18 = vsub.f32 %v120_v5, %v131_v17 }
  0xa7   :  { %v133_v19 = vmul.f32 1.442695, %v132_v18 }
  0xa9   :  { %233 = vpow2.f32 %v133_v19 }
  0xb3   :  { %v234_v20 = vpop.eup %233 }
  0xb4   :  { %135 = vadd.xlane.f32.xlu1 %v234_v20 }
  0xfa   :  { %v114_v21 = vpop.f32.mrb[0].mxu0 }
  0xfb   :  { %v118_v22 = vmul.f32 0.25, %v114_v21  ;;  %v213_v23 = vpop.f32.mrb[1].mxu0 }
  0xfd   :  { %121 = vmax.xlane.f32.xlu0 %v118_v22 }
 0x141   :  { %v136_v24 = vpop.xlane.xlu1 %135 }
 0x142   :  { %235 = vrcp.f32 %v136_v24 }
 0x14c   :  { %v236_v25 = vpop.eup %235 }
 0x14d   :  { %v138_v30 = vmul.f32 %v236_v25, %v234_v20 }
 0x18a   :  { %v122_v26 = vpop.xlane.xlu0 %121 }
 0x18b   :  { %v123_v27 = vsub.f32 %v118_v22, %v122_v26 }
 0x18d   :  { %v124_v28 = vmul.f32 1.442695, %v123_v27  ;;  %v141_v29 = vsub.f32 %v132_v18, %v123_v27 }
 0x18f   :  { %237 = vpow2.f32 %v124_v28  ;;  %v142_v31 = vmul.f32 %v141_v29, %v138_v30 }
 0x190   :  { %239 = vlog2.f32 %v136_v24 }
 0x191   :  { %143 = vadd.xlane.f32.xlu0 %v142_v31 }
 0x199   :  { %v238_v32 = vpop.eup %237 }
 0x19a   :  { %126 = vadd.xlane.f32.xlu1 %v238_v32  ;;  %v240_v35 = vpop.eup %239 }
 0x19b   :  { %v140_v38 = vmul.f32 0.6931472, %v240_v35 }
 0x21e   :  { %v144_v41 = vpop.xlane.xlu0 %143 }
 0x227   :  { %v127_v33 = vpop.xlane.xlu1 %126 }
 0x228   :  { %241 = vlog2.f32 %v127_v33 }
 0x232   :  { %v242_v36 = vpop.eup %241 }
 0x233   :  { %v129_v39 = vmul.f32 0.6931472, %v242_v36 }
 0x235   :  { %v145_v40 = vsub.f32 %v129_v39, %v140_v38 }
 0x237   :  { %v146_v42 = vadd.f32 %v145_v40, %v144_v41 }
 0x239   :  { %v153_v43 = vsel %vm152_vm3, %v146_v42, 0.0 }
 0x23a   :  { %v155_v44 = vrot.slane %v153_v43, 4 }
 0x23c   :  { %v156_v45 = vadd.f32 %v155_v44, %v153_v43 }
 0x23e   :  { %v157_v46 = vrot.slane %v156_v45, 2 }
 0x240   :  { %v158_v47 = vadd.f32 %v157_v46, %v156_v45 }
 0x242   :  { %v159_v48 = vrot.slane %v158_v47, 1 }
 0x244   :  { %v160_v50 = vadd.f32 %v159_v48, %v158_v47 }
 0x246   :  { %v161_v51 = vadd.f32 %v160_v50, %v154_v49 }
 0x248   :  { %163 = vst.msk [vmem:[#allocation2] sm:$0x1] %vm33_vm0, %v161_v51 }
 0x24f   :  { %v167_v52 = vld [vmem:[#allocation2] sm:$0x1] }
 0x250   :  { %v168_v53 = vmul.f32 8.0, %v167_v52 }
 0x252   :  { %169 = vst.msk [vmem:[#allocation6] sm:$0x1] %vm33_vm0, %v168_v53 }
 0x253   :  { %276 = shalt.err (!%p273_p12)
}
 0x254   :  { %s277_s6 = scalar_lea.hbm %s354_s3, 16 }
 0x255   :  { %p278_p13 = scmp.ne.s32.totalorder %s354_s3, %s277_s6  ;;  %p281_p0 = scmp.lt.u32.totalorder %s277_s6, %s354_s3 }
 0x257   :  { %p283_p1 = pnand %p281_p0, %p278_p13 }
 0x259   :  { %286 = shalt.err (!%p283_p1)
}
 0x25a   :  { %179 = dma.vmem_to_hbm [thread:$0]  %s177_s28, 16, %s354_s3, [#allocation5]  }
 0x25b   :  { %289 = dma.done.wait [#allocation5], 16  }
 0x25c   :  { %290 = vsyncadd [#allocation5], 4294967280 }
 0x25d   :  { %183 = vsyncpa [#allocation4], 1 }
 0x25e   :  { %184 = vsyncpa [#allocation5], 1 }

</bundles_post_ra>
